<compile_context>
chip_gen: v5e
topology: v5e:2x2
jax: 0.10.0
libtpu: 0.0.40
codegen_flags: <defaults>
</compile_context>

<pallas_src>
import functools
import math

import jax
import jax.numpy as jnp
from jax import lax
from jax.experimental import pallas as pl
from jax.experimental.pallas import tpu as pltpu


# ----------------------------- Pallas kernel --------------------------------

def _input_layer_kernel(p_ref, w_ref, add_ref, o_ref):
    """One row tile: (tm, K) @ (K, E) on the MXU (+ per-token addend), then a
    single aligned full-tile store with E on the lane axis."""
    acc = jnp.dot(p_ref[...], w_ref[...], preferred_element_type=jnp.float32)
    o_ref[...] = (acc + add_ref[...]).astype(o_ref.dtype)


# ----------------------------- helpers ---------------------------------------

def _round_up(x, m):
    return (x + m - 1) // m * m


def _pick_row_tile(m_rows):
    """Row tile for the collapsed (batch*token) M dimension.

    Targets 256 rows (native MXU dimension on v6e/v7x; 2x128 on v5e).  For
    small problems split into (at least) two sublane-aligned tiles so the
    "parallel" grid axis can still shard across v7x's two TensorCores.
    """
    if m_rows >= 512:
        return 256
    half = -(-m_rows // 2)
    return max(8, _round_up(half, 8))


def _vmem_limit_bytes():
    """Per-generation scoped-VMEM ceiling (~3/4 of physical VMEM):
    ~96 MB on v5e/v6e (128 MiB physical), ~48 MB on v7x (64 MiB physical)."""
    try:
        cap = int(pltpu.get_tpu_info().vmem_capacity_bytes)
    except Exception:  # info unavailable -> conservative, safe on all chips
        cap = 64 * 1024 * 1024
    return (cap * 3) // 4


# ----------------------------- parameters ------------------------------------

def init_params(key, *, in_channels, embed_dim, num_patch_row,
                image_size_h, image_size_w):
    del image_size_h
    patch_size = image_size_w // num_patch_row
    num_patch = num_patch_row ** 2
    fan_in = in_channels * patch_size * patch_size
    bound = 1.0 / math.sqrt(fan_in)
    k_w, k_b, k_cls, k_pos = jax.random.split(key, 4)
    return {
        "conv_w": jax.random.uniform(
            k_w, (embed_dim, in_channels, patch_size, patch_size),
            jnp.float32, -bound, bound),
        "conv_b": jax.random.uniform(k_b, (embed_dim,), jnp.float32, -bound, bound),
        "class_token": jax.random.normal(k_cls, (1, 1, embed_dim), jnp.float32),
        "positional_embed": jax.random.normal(
            k_pos, (1, num_patch + 1, embed_dim), jnp.float32),
    }


def prepare_input_layer_params(params):
    """One-time parameter preparation (hoisted out of the forward pass).

    Returns:
      w_mat:  (C*P*P, E) patch-embedding matmul weight (conv OIHW flattened).
      addend: (num_patch + 1, E) per-token additive term:
              row 0  = class_token + positional_embed[0]
              row 1: = positional_embed[1:] + conv bias
    """
    E, C, P, _ = params["conv_w"].shape
    w_mat = params["conv_w"].reshape(E, C * P * P).T
    pos = params["positional_embed"][0]                    # (T, E)
    cls_row = params["class_token"].reshape(1, E) + pos[0:1]
    tok_rows = pos[1:] + params["conv_b"][None, :]
    addend = jnp.concatenate([cls_row, tok_rows], axis=0)  # (T, E)
    return w_mat, addend


# ----------------------------- forward wrapper --------------------------------

def vit_input_layer(x, w_mat, addend, *, num_patch_row,
                    matmul_dtype=jnp.float32):
    """ViTInputLayer forward: (B, C, H, W) -> (B, num_patch + 1, embed_dim)."""
    B, C, H, W = x.shape
    P = W // num_patch_row
    nh, nw = H // P, W // P
    Np = nh * nw
    T, E = addend.shape
    K = C * P * P
    assert T == Np + 1

    # Stride-P conv == per-patch matmul: im2col is wrapper-side layout plumbing.
    patches = (x.reshape(B, C, nh, P, nw, P)
                 .transpose(0, 2, 4, 1, 3, 5)
                 .reshape(B, Np, K))
    # Zero class-token placeholder row per image; its value arrives via addend.
    rows = jnp.concatenate([jnp.zeros((B, 1, K), patches.dtype), patches], axis=1)
    rows = rows.reshape(B * T, K)
    add_rows = jnp.broadcast_to(addend[None], (B, T, E)).reshape(B * T, E)

    # Collapse (batch, token) into the matmul M dimension and tile it.
    m_rows = B * T
    tm = _pick_row_tile(m_rows)
    m_pad = _round_up(m_rows, tm)
    if m_pad != m_rows:
        rows = jnp.pad(rows, ((0, m_pad - m_rows), (0, 0)))
        add_rows = jnp.pad(add_rows, ((0, m_pad - m_rows), (0, 0)))

    # Optional bf16 matmul operands (f32 accumulation inside the kernel).
    rows = rows.astype(matmul_dtype)
    w_mat = w_mat.astype(matmul_dtype)
    itemsize = rows.dtype.itemsize

    grid = (m_pad // tm,)
    bytes_accessed = (rows.size * itemsize + w_mat.size * itemsize
                      + add_rows.size * 4 + m_pad * E * 4)

    out = pl.pallas_call(
        _input_layer_kernel,
        out_shape=jax.ShapeDtypeStruct((m_pad, E), jnp.float32),
        grid=grid,
        in_specs=[
            pl.BlockSpec((tm, K), lambda i: (i, 0)),
            # Pinned weight (constant index map).  Small enough that the
            # default double-buffering fits comfortably even at ViT-Base scale
            # for this kernel, so no single-buffering override is needed.
            pl.BlockSpec((K, E), lambda i: (0, 0)),
            pl.BlockSpec((tm, E), lambda i: (i, 0)),
        ],
        out_specs=pl.BlockSpec((tm, E), lambda i: (i, 0)),
        compiler_params=pltpu.CompilerParams(
            dimension_semantics=("parallel",),
            vmem_limit_bytes=_vmem_limit_bytes()),
        cost_estimate=pl.CostEstimate(
            flops=2 * m_pad * K * E + m_pad * E,
            transcendentals=0,
            bytes_accessed=int(bytes_accessed)),
    )(rows, w_mat, add_rows)

    return out[:m_rows].reshape(B, T, E)


# ----------------------------- pure-JAX reference -----------------------------

def vit_input_layer_reference(params, x):
    """Pure-JAX mirror of the PyTorch module's forward (for verification)."""
    B = x.shape[0]
    E, _, P, _ = params["conv_w"].shape
    y = lax.conv_general_dilated(x, params["conv_w"], window_strides=(P, P),
                                 padding="VALID",
                                 dimension_numbers=("NCHW", "OIHW", "NCHW"))
    y = y + params["conv_b"][None, :, None, None]
    tok = y.reshape(B, E, -1).transpose(0, 2, 1)     # flatten(2) + transpose(1, 2)
    cls = jnp.broadcast_to(params["class_token"], (B, 1, E))
    # TODO(synk): reference torch.concat omits dim=; intended token-axis concat.
    z = jnp.concatenate([cls, tok], axis=1)
    return z + params["positional_embed"]


# ----------------------------- main -------------------------------------------

if __name__ == "__main__":
    key = jax.random.PRNGKey(0)
    k_params, k_x = jax.random.split(key)

    batch = 2
    in_channels = 4
    embed_dim = 32
    num_patch_row = 2
    image_size_h = image_size_w = 16

    params = init_params(k_params, in_channels=in_channels, embed_dim=embed_dim,
                         num_patch_row=num_patch_row,
                         image_size_h=image_size_h, image_size_w=image_size_w)
    x = jax.random.normal(k_x, (batch, in_channels, image_size_h, image_size_w),
                          jnp.float32)

    # One-time parameter preparation (hoisted out of the forward pass).
    w_mat, addend = prepare_input_layer_params(params)
    ref = vit_input_layer_reference(params, x)

    T = num_patch_row ** 2 + 1

    # f32 path — must match the reference tightly.
    fwd = jax.jit(functools.partial(vit_input_layer, num_patch_row=num_patch_row))
    out = fwd(x, w_mat, addend)
    jax.block_until_ready(out)
    assert out.shape == (batch, T, embed_dim), out.shape
    assert bool(jnp.all(jnp.isfinite(out)))
    assert bool(jnp.allclose(out, ref, rtol=1e-4, atol=1e-4)), \
        float(jnp.max(jnp.abs(out - ref)))

    # bf16 matmul-operand path (f32 accumulation) — perf option from review.
    fwd_bf16 = jax.jit(functools.partial(vit_input_layer,
                                         num_patch_row=num_patch_row,
                                         matmul_dtype=jnp.bfloat16))
    out_bf16 = fwd_bf16(x, w_mat, addend)
    jax.block_until_ready(out_bf16)
    assert out_bf16.shape == (batch, T, embed_dim)
    assert bool(jnp.all(jnp.isfinite(out_bf16)))
    assert bool(jnp.allclose(out_bf16, ref, rtol=3e-2, atol=3e-2))

    print("KERNEL_OK")
</pallas_src>

<mosaic_0001>
module attributes {stable_mosaic.version = 11 : i64} {
  func.func @_input_layer_kernel(%arg0: i32, %arg1: memref<8x256xf32, #tpu.memory_space<vmem>>, %arg2: memref<256x32xf32, #tpu.memory_space<vmem>>, %arg3: memref<8x32xf32, #tpu.memory_space<vmem>>, %arg4: memref<8x32xf32, #tpu.memory_space<vmem>>) attributes {dimension_semantics = [#tpu.dimension_semantics<parallel>], iteration_bounds = array<i64: 2>, scalar_prefetch = 0 : i64, scratch_operands = 0 : i64, tpu.core_type = #tpu.core_type<tc>, window_params = [{transform_indices = @transform_0, window_bounds = array<i64: 8, 256>}, {pipeline_mode = #tpu.pipeline_mode<synchronous>, transform_indices = @transform_1, window_bounds = array<i64: 256, 32>}, {transform_indices = @transform_2, window_bounds = array<i64: 8, 32>}, {transform_indices = @transform_3, window_bounds = array<i64: 8, 32>}]} {
    %c0 = arith.constant 0 : index
    %c0_0 = arith.constant 0 : index
    %0 = vector.load %arg1[%c0, %c0_0] : memref<8x256xf32, #tpu.memory_space<vmem>>, vector<8x256xf32>
    %c0_1 = arith.constant 0 : index
    %c0_2 = arith.constant 0 : index
    %1 = vector.load %arg2[%c0_1, %c0_2] : memref<256x32xf32, #tpu.memory_space<vmem>>, vector<256x32xf32>
    %cst = arith.constant dense<0.000000e+00> : vector<8x32xf32>
    %2 = tpu.matmul %0, %1, %cst {dimension_numbers = #tpu.dot_dimension_numbers<[1], [0], [0], [1], [0, 0, 1, 1], [], []>} : vector<8x256xf32>, vector<256x32xf32>, vector<8x32xf32> -> vector<8x32xf32>
    %c0_3 = arith.constant 0 : index
    %c0_4 = arith.constant 0 : index
    %3 = vector.load %arg3[%c0_3, %c0_4] : memref<8x32xf32, #tpu.memory_space<vmem>>, vector<8x32xf32>
    %4 = arith.addf %2, %3 : vector<8x32xf32>
    %c0_5 = arith.constant 0 : index
    %c0_6 = arith.constant 0 : index
    %5 = vector.load %arg4[%c0_5, %c0_6] : memref<8x32xf32, #tpu.memory_space<vmem>>, vector<8x32xf32>
    tpu.vector_store %arg4[%c0_5, %c0_6], %4 {strides = array<i32>} : memref<8x32xf32, #tpu.memory_space<vmem>>, vector<8x32xf32>,
    return
  }
  func.func @transform_0(%arg0: i32) -> (i32, i32) {
    %c0_i32 = arith.constant 0 : i32
    %c0_i32_0 = arith.constant 0 : i32
    return %arg0, %c0_i32 : i32, i32
  }
  func.func @transform_1(%arg0: i32) -> (i32, i32) {
    %c0_i32 = arith.constant 0 : i32
    %c0_i32_0 = arith.constant 0 : i32
    %c0_i32_1 = arith.constant 0 : i32
    return %c0_i32, %c0_i32_0 : i32, i32
  }
  func.func @transform_2(%arg0: i32) -> (i32, i32) {
    %c0_i32 = arith.constant 0 : i32
    %c0_i32_0 = arith.constant 0 : i32
    return %arg0, %c0_i32 : i32, i32
  }
  func.func @transform_3(%arg0: i32) -> (i32, i32) {
    %c0_i32 = arith.constant 0 : i32
    %c0_i32_0 = arith.constant 0 : i32
    return %arg0, %c0_i32 : i32, i32
  }
}

</mosaic_0001>

<bundles_post_ra>
// kernel: vit_input_layer.1
= control target key start
LH: loop header
LB: loop body
LE: loop exit
PB: predicated region body
PF: predicated region fallthrough
CT: control target
= control target key end

     0   :  { %s376_s12 = smov 0   ;;  %s500_s0 = inlined_call_operand.vmem [shape: f32[16,256], index: 0, kind: input, shape index: {}]   ;;  %s501_s1 = inlined_call_operand.vmem [shape: f32[256,32], index: 1, kind: input, shape index: {}]   ;;  %s502_s2 = inlined_call_operand.vmem [shape: f32[16,32], index: 2, kind: input, shape index: {}]   ;;  %s503_s3 = inlined_call_operand.vmem [shape: f32[16,32], index: 3, kind: output, shape index: {}]  }
   0x1 LB: > { %s328_s13 = sadd.s32 4294967295, %s354_s12   ;;  %p332_p0 = scmp.ge.s32.totalorder %s354_s12, 1  ;;  %s354_s12 = sphi %s376_s12, %s13_s12  }
   0x2   : > { %p146_p1 = scmp.lt.s32.totalorder %s354_s12, 3 }
   0x4   : > { %p147_p2 = pnand %p332_p0, %p146_p1 }
   0x5   : > { %p173_p3 = scmp.lt.s32.totalorder (!%p147_p2), %s328_s13, 1 }
   0x6   : > { %150 = sbr.rel (%p147_p2) target bundleno = 174 (0xae), region = 32 }
   0xb   : > { %v203_v0 = vld [vmem:[%s501_s1 + $0x78] sm:$0xff]  ;;  %v202_v1 = vld [vmem:[%s501_s1 + $0x70] sm:$0xff]  ;;  %v201_v4 = vld [vmem:[%s501_s1 + $0x68] sm:$0xff]  ;;  %s505_s13 = smov (!%p173_p3, %s328_s13), 1  ;;  %vm261_vm0 = vcmask 261120  }
   0xc   : > { %v219_v2 = vld [vmem:[%s501_s1 + $0xf8] sm:$0xff]  ;;  %221 = vmatpush.msra.mxu0 %v203_v0  ;;  %v218_v3 = vld [vmem:[%s501_s1 + $0xf0] sm:$0xff]  ;;  %v217_v5 = vld [vmem:[%s501_s1 + $0xe8] sm:$0xff]  ;;  %s339_s16 = sshll.u32 %s505_s13, 4  ;;  %s335_s5 = sshll.u32 %s505_s13, 3 }
   0xd   : > { %241 = vmatpush.msra.mxu1 %v219_v2  ;;  %v200_v6 = vld [vmem:[%s501_s1 + $0x60] sm:$0xff]  ;;  %v199_v8 = vld [vmem:[%s501_s1 + $0x58] sm:$0xff]  ;;  %v198_v10 = vld [vmem:[%s501_s1 + $0x50] sm:$0xff]  ;;  %s177_s27 = scalar_lea.vmem %s500_s0, %s339_s16  ;;  %s181_s8 = scalar_lea.vmem %s502_s2, %s335_s5 }
   0xe   : > { %222 = vmatpush.msra.mxu0 %v202_v1  ;;  %v216_v7 = vld [vmem:[%s501_s1 + $0xe0] sm:$0xff]  ;;  %v215_v9 = vld [vmem:[%s501_s1 + $0xd8] sm:$0xff]  ;;  %v214_v11 = vld [vmem:[%s501_s1 + $0xd0] sm:$0xff]  ;;  %s185_s11 = scalar_lea.vmem %s503_s3, %s335_s5 }
   0xf   : > { %242 = vmatpush.msra.mxu1 %v218_v3  ;;  %v197_v12 = vld [vmem:[%s501_s1 + $0x48] sm:$0xff]  ;;  %v196_v14 = vld [vmem:[%s501_s1 + $0x40] sm:$0xff]  ;;  %v195_v16 = vld [vmem:[%s501_s1 + $0x38] sm:$0xff] }
  0x10   : > { %223 = vmatpush.msra.mxu0 %v201_v4  ;;  %v213_v13 = vld [vmem:[%s501_s1 + $0xc8] sm:$0xff]  ;;  %v212_v15 = vld [vmem:[%s501_s1 + $0xc0] sm:$0xff]  ;;  %v211_v17 = vld [vmem:[%s501_s1 + $0xb8] sm:$0xff] }
  0x11   : > { %243 = vmatpush.msra.mxu1 %v217_v5  ;;  %v194_v18 = vld [vmem:[%s501_s1 + $0x30] sm:$0xff]  ;;  %v193_v20 = vld [vmem:[%s501_s1 + $0x28] sm:$0xff]  ;;  %v192_v22 = vld [vmem:[%s501_s1 + $0x20] sm:$0xff] }
  0x12   : > { %224 = vmatpush.msra.mxu0 %v200_v6  ;;  %v210_v19 = vld [vmem:[%s501_s1 + $0xb0] sm:$0xff]  ;;  %v209_v21 = vld [vmem:[%s501_s1 + $0xa8] sm:$0xff]  ;;  %v208_v23 = vld [vmem:[%s501_s1 + $0xa0] sm:$0xff] }
  0x13   : > { %244 = vmatpush.msra.mxu1 %v216_v7  ;;  %v191_v24 = vld [vmem:[%s501_s1 + $0x18] sm:$0xff]  ;;  %v190_v26 = vld [vmem:[%s501_s1 + $0x10] sm:$0xff]  ;;  %v189_v28 = vld [vmem:[%s501_s1 + $0x8] sm:$0xff] }
  0x14   : > { %225 = vmatpush.msra.mxu0 %v199_v8  ;;  %v207_v25 = vld [vmem:[%s501_s1 + $0x98] sm:$0xff]  ;;  %v206_v27 = vld [vmem:[%s501_s1 + $0x90] sm:$0xff]  ;;  %v205_v29 = vld [vmem:[%s501_s1 + $0x88] sm:$0xff] }
  0x15   : > { %245 = vmatpush.msra.mxu1 %v215_v9  ;;  %v188_v30 = vld [vmem:[%s501_s1] sm:$0xff]  ;;  %v187_v33 = vld [vmem:[%s177_s27 + $0x8] sm:$0xff] }
  0x16   : > { %226 = vmatpush.msra.mxu0 %v198_v10  ;;  %v204_v31 = vld [vmem:[%s501_s1 + $0x80] sm:$0xff] }
  0x17   : > { %246 = vmatpush.msra.mxu1 %v214_v11  ;;  %v186_v32 = vld [vmem:[%s177_s27] sm:$0xff] }
  0x18   : > { %227 = vmatpush.msra.mxu0 %v197_v12  ;;  %v220_v34 = vld [vmem:[%s181_s8] sm:$0xff] }
  0x19   : > { %247 = vmatpush.msra.mxu1 %v213_v13 }
  0x1a   : > { %228 = vmatpush.msra.mxu0 %v196_v14 }
  0x1b   : > { %248 = vmatpush.msra.mxu1 %v212_v15 }
  0x1c   : > { %229 = vmatpush.msra.mxu0 %v195_v16 }
  0x1d   : > { %249 = vmatpush.msra.mxu1 %v211_v17 }
  0x1e   : > { %230 = vmatpush.msra.mxu0 %v194_v18 }
  0x1f   : > { %250 = vmatpush.msra.mxu1 %v210_v19 }
  0x20   : > { %231 = vmatpush.msra.mxu0 %v193_v20 }
  0x21   : > { %251 = vmatpush.msra.mxu1 %v209_v21 }
  0x22   : > { %232 = vmatpush.msra.mxu0 %v192_v22 }
  0x23   : > { %252 = vmatpush.msra.mxu1 %v208_v23 }
  0x24   : > { %233 = vmatpush.msra.mxu0 %v191_v24 }
  0x25   : > { %253 = vmatpush.msra.mxu1 %v207_v25 }
  0x26   : > { %234 = vmatpush.msra.mxu0 %v190_v26 }
  0x27   : > { %254 = vmatpush.msra.mxu1 %v206_v27 }
  0x28   : > { %235 = vmatpush.msra.mxu0 %v189_v28 }
  0x29   : > { %255 = vmatpush.msra.mxu1 %v205_v29 }
  0x2a   : > { %236 = vmatpush.msra.mxu0 %v188_v30 }
  0x2b   : > { %256 = vmatpush.msra.mxu1 %v204_v31  ;;  %237 = vmatmul.f32.vlgmr.msra.gmra.mxu0 %v186_v32 }
  0x2c   : > { %257 = vmatmul.f32.vlgmr.msra.gmra.mxu1 %v187_v33 }
  0xa8   : > { %v238_v35 = vpop.f32.mrf.mxu0 }
  0xa9   : > { %v258_v36 = vpop.f32.mrf.mxu1  ;;  %v239_v37 = vadd.f32 %v238_v35, %v220_v34 }
  0xab   : > { %v259_v38 = vadd.f32 %v258_v36, %v239_v37 }
  0xad   : > { %262 = vst.msk [vmem:[%s185_s11] sm:$0xff] %vm261_vm0, %v259_v38 }
  0xae PF: > { %s13_s12 = sadd.s32 1, %s354_s12  }
  0xaf   : > { %p10_p4 = scmp.ge.s32.totalorder %s13_s12, 4  }
  0xb1   :  { %12 = sbr.rel (!%p10_p4) target bundleno = 1 (0x1), region = 65 }

</bundles_post_ra>
